<compile_context>
chip_gen: v7x
topology: tpu7x:2x2x1
jax: 0.10.0
libtpu: 0.0.40
codegen_flags: <defaults>
</compile_context>

<pallas_src>
import jax
import jax.numpy as jnp
import numpy as np
from jax import lax
from jax.experimental import pallas as pl
from jax.experimental.pallas import tpu as pltpu

N_TYPE = 17                       # one-hot classes for items[..., 14]
N_EQ = 2                          # one-hot classes for items[..., 1]
FEAT_IN = 16                      # raw feature count per item
FEAT = N_TYPE + N_EQ + 12         # 31 = Linear in-features
N_CLS = 64                        # padded combined-class count (2*tid + eq in [0, 34))
CONT_IDXS = (3, 4, 5, 6, 7, 8, 9, 10, 11, 12, 13, 15)
CONT_SCALE = (1 / 10, 1 / 10, 1 / 10, 1 / 100, 1 / 100, 1 / 100,
              1 / 40, 1 / 40, 1 / 40, 1 / 100, 1 / 100, 1 / 100)


def item_encoder_kernel(x_ref, e_ref, wcomb_ref, wc_ref, out_ref):
    x = x_ref[...]                                              # (tm, 16) raw features

    # Broadcast the combined discrete class (2*type_id + equipped) across all lanes
    # with one tiny MXU matmul -- avoids per-row lane broadcasts on the VPU.
    cmb = jnp.dot(x, e_ref[...], preferred_element_type=jnp.float32)      # (tm, N_CLS)
    cls = lax.broadcasted_iota(jnp.int32, cmb.shape, 1)
    onehot = (cls == cmb.astype(jnp.int32)).astype(jnp.float32)           # (tm, N_CLS)

    # Discrete contribution (bias folded into the table) + continuous contribution.
    out = jnp.dot(onehot, wcomb_ref[...], preferred_element_type=jnp.float32)  # (tm, H)
    out = out + jnp.dot(x, wc_ref[...], preferred_element_type=jnp.float32)
    out_ref[...] = out


def _round_up(x, m):
    return ((x + m - 1) // m) * m


def item_encoder(items, w, b, *, tm=4096):
    """items: (B, N, 16); w: (31, H) Linear weight (in-features major); b: (H,).
    Returns (B, N, H) float32, matching ItemEncoder.forward."""
    B, N, F = items.shape
    assert F == FEAT_IN
    M = B * N
    H = w.shape[1]

    # Natural layout, no transposes / pads on the activations.
    x = items.reshape(M, F).astype(jnp.float32)

    # Row tile: multiple of 8 sublanes, clamped to the (8-rounded) item count.
    tm = max(8, (tm // 8) * 8)
    tm = min(tm, _round_up(M, 8))
    grid = (pl.cdiv(M, tm),)            # partial last block is masked by Pallas

    w = w.astype(jnp.float32)
    b = b.astype(jnp.float32)

    # Combined discrete table (N_CLS, H): row 2*tid + eq = W_tid[tid] + W_eq[eq] + bias.
    w_tid = w[:N_TYPE]                                            # (17, H)
    w_eq = w[N_TYPE:N_TYPE + N_EQ]                                # (2, H)
    wcomb = (w_tid[:, None, :] + w_eq[None, :, :] + b[None, None, :]
             ).reshape(N_TYPE * N_EQ, H)                          # (34, H)
    wcomb = jnp.pad(wcomb, ((0, N_CLS - N_TYPE * N_EQ), (0, 0)))  # (N_CLS, H)

    # Lane-broadcast matrix: (x @ e)[m, k] = 2 * type_id + equipped, for every lane k.
    e_np = np.zeros((FEAT_IN, N_CLS), np.float32)
    e_np[14, :] = float(N_EQ)
    e_np[1, :] = 1.0
    e = jnp.asarray(e_np)

    # Continuous slab (16, H): weight row for each continuous feature pre-divided by its
    # scale, placed at that raw feature's row (zeros elsewhere, incl. rows 1 and 14).
    w_cont = w[N_TYPE + N_EQ:] / jnp.asarray(CONT_SCALE, jnp.float32)[:, None]  # (12, H)
    wc = jnp.zeros((FEAT_IN, H), jnp.float32).at[jnp.asarray(CONT_IDXS), :].set(w_cont)

    out = pl.pallas_call(
        item_encoder_kernel,
        out_shape=jax.ShapeDtypeStruct((M, H), jnp.float32),
        grid=grid,
        in_specs=[
            pl.BlockSpec((tm, FEAT_IN), lambda i: (i, 0)),     # items, rows on sublanes
            pl.BlockSpec((FEAT_IN, N_CLS), lambda i: (0, 0)),  # lane-broadcast matrix
            pl.BlockSpec((N_CLS, H), lambda i: (0, 0)),        # combined discrete+bias
            pl.BlockSpec((FEAT_IN, H), lambda i: (0, 0)),      # scaled continuous slab
        ],
        out_specs=pl.BlockSpec((tm, H), lambda i: (i, 0)),
        compiler_params=pltpu.CompilerParams(dimension_semantics=("parallel",)),
    )(x, e, wcomb, wc)

    return out.reshape(B, N, H)


def item_encoder_ref(items, w, b):
    """Pure-JAX reference mirroring the PyTorch forward (scale-divide then Linear)."""
    oh_eq = jax.nn.one_hot(items[:, :, 1].astype(jnp.int32), N_EQ, dtype=jnp.float32)
    oh_tid = jax.nn.one_hot(items[:, :, 14].astype(jnp.int32), N_TYPE, dtype=jnp.float32)
    cont = items[:, :, jnp.asarray(CONT_IDXS)] / jnp.asarray(CONT_SCALE, jnp.float32)
    emb = jnp.concatenate([oh_tid, oh_eq, cont], axis=-1)
    return jnp.dot(emb, w, precision=jax.lax.Precision.HIGHEST) + b


if __name__ == "__main__":
    B, N, F, H = 2, 8, 16, 32
    key = jax.random.PRNGKey(0)
    k_items, k_eq, k_tid, k_w, k_b = jax.random.split(key, 5)

    # Moderate continuous magnitudes (divided by scales <= 1/100 inside the module).
    items = jax.random.uniform(k_items, (B, N, F), dtype=jnp.float32) * 0.1
    items = items.at[:, :, 1].set(
        jax.random.randint(k_eq, (B, N), 0, N_EQ).astype(jnp.float32))
    items = items.at[:, :, 14].set(
        jax.random.randint(k_tid, (B, N), 0, N_TYPE).astype(jnp.float32))

    # Deterministic synthetic fc parameters (Linear(31, H)), stored as (31, H).
    w = jax.random.normal(k_w, (FEAT, H), dtype=jnp.float32) * 0.1
    b = jax.random.normal(k_b, (H,), dtype=jnp.float32) * 0.1

    out = item_encoder(items, w, b)
    out = jax.block_until_ready(out)

    ref = item_encoder_ref(items, w, b)
    np.testing.assert_allclose(np.asarray(out), np.asarray(ref), rtol=5e-3, atol=5e-3)
    print("KERNEL_OK")
</pallas_src>

<mosaic_0001>
module attributes {stable_mosaic.version = 11 : i64} {
  func.func @item_encoder_kernel(%arg0: i32, %arg1: memref<16x16xf32, #tpu.memory_space<vmem>>, %arg2: memref<16x64xf32, #tpu.memory_space<vmem>>, %arg3: memref<64x32xf32, #tpu.memory_space<vmem>>, %arg4: memref<16x32xf32, #tpu.memory_space<vmem>>, %arg5: memref<16x32xf32, #tpu.memory_space<vmem>>) attributes {dimension_semantics = [#tpu.dimension_semantics<parallel>], iteration_bounds = array<i64: 1>, scalar_prefetch = 0 : i64, scratch_operands = 0 : i64, tpu.core_type = #tpu.core_type<tc>, window_params = [{transform_indices = @transform_0, window_bounds = array<i64: 16, 16>}, {pipeline_mode = #tpu.pipeline_mode<synchronous>, transform_indices = @transform_1, window_bounds = array<i64: 16, 64>}, {pipeline_mode = #tpu.pipeline_mode<synchronous>, transform_indices = @transform_2, window_bounds = array<i64: 64, 32>}, {pipeline_mode = #tpu.pipeline_mode<synchronous>, transform_indices = @transform_3, window_bounds = array<i64: 16, 32>}, {transform_indices = @transform_4, window_bounds = array<i64: 16, 32>}]} {
    %c0 = arith.constant 0 : index
    %c0_0 = arith.constant 0 : index
    %0 = vector.load %arg1[%c0, %c0_0] : memref<16x16xf32, #tpu.memory_space<vmem>>, vector<16x16xf32>
    %c0_1 = arith.constant 0 : index
    %c0_2 = arith.constant 0 : index
    %1 = vector.load %arg2[%c0_1, %c0_2] : memref<16x64xf32, #tpu.memory_space<vmem>>, vector<16x64xf32>
    %cst = arith.constant dense<0.000000e+00> : vector<16x64xf32>
    %2 = tpu.matmul %0, %1, %cst {dimension_numbers = #tpu.dot_dimension_numbers<[1], [0], [0], [1], [0, 0, 1, 1], [], []>} : vector<16x16xf32>, vector<16x64xf32>, vector<16x64xf32> -> vector<16x64xf32>
    %3 = tpu.iota {dimensions = array<i32: 1>} : vector<16x64xi32>
    %4 = arith.fptosi %2 : vector<16x64xf32> to vector<16x64xi32>
    %5 = arith.cmpi eq, %3, %4 : vector<16x64xi32>
    %6 = arith.extui %5 : vector<16x64xi1> to vector<16x64xi32>
    %7 = arith.sitofp %6 : vector<16x64xi32> to vector<16x64xf32>
    %c0_3 = arith.constant 0 : index
    %c0_4 = arith.constant 0 : index
    %8 = vector.load %arg3[%c0_3, %c0_4] : memref<64x32xf32, #tpu.memory_space<vmem>>, vector<64x32xf32>
    %cst_5 = arith.constant dense<0.000000e+00> : vector<16x32xf32>
    %9 = tpu.matmul %7, %8, %cst_5 {dimension_numbers = #tpu.dot_dimension_numbers<[1], [0], [0], [1], [0, 0, 1, 1], [], []>} : vector<16x64xf32>, vector<64x32xf32>, vector<16x32xf32> -> vector<16x32xf32>
    %c0_6 = arith.constant 0 : index
    %c0_7 = arith.constant 0 : index
    %10 = vector.load %arg4[%c0_6, %c0_7] : memref<16x32xf32, #tpu.memory_space<vmem>>, vector<16x32xf32>
    %cst_8 = arith.constant dense<0.000000e+00> : vector<16x32xf32>
    %11 = tpu.matmul %0, %10, %cst_8 {dimension_numbers = #tpu.dot_dimension_numbers<[1], [0], [0], [1], [0, 0, 1, 1], [], []>} : vector<16x16xf32>, vector<16x32xf32>, vector<16x32xf32> -> vector<16x32xf32>
    %12 = arith.addf %9, %11 : vector<16x32xf32>
    %c0_9 = arith.constant 0 : index
    %c0_10 = arith.constant 0 : index
    %13 = vector.load %arg5[%c0_9, %c0_10] : memref<16x32xf32, #tpu.memory_space<vmem>>, vector<16x32xf32>
    tpu.vector_store %arg5[%c0_9, %c0_10], %12 {strides = array<i32>} : memref<16x32xf32, #tpu.memory_space<vmem>>, vector<16x32xf32>,
    return
  }
  func.func @transform_0(%arg0: i32) -> (i32, i32) {
    %c0_i32 = arith.constant 0 : i32
    %c0_i32_0 = arith.constant 0 : i32
    return %arg0, %c0_i32 : i32, i32
  }
  func.func @transform_1(%arg0: i32) -> (i32, i32) {
    %c0_i32 = arith.constant 0 : i32
    %c0_i32_0 = arith.constant 0 : i32
    %c0_i32_1 = arith.constant 0 : i32
    return %c0_i32, %c0_i32_0 : i32, i32
  }
  func.func @transform_2(%arg0: i32) -> (i32, i32) {
    %c0_i32 = arith.constant 0 : i32
    %c0_i32_0 = arith.constant 0 : i32
    %c0_i32_1 = arith.constant 0 : i32
    return %c0_i32, %c0_i32_0 : i32, i32
  }
  func.func @transform_3(%arg0: i32) -> (i32, i32) {
    %c0_i32 = arith.constant 0 : i32
    %c0_i32_0 = arith.constant 0 : i32
    %c0_i32_1 = arith.constant 0 : i32
    return %c0_i32, %c0_i32_0 : i32, i32
  }
  func.func @transform_4(%arg0: i32) -> (i32, i32) {
    %c0_i32 = arith.constant 0 : i32
    %c0_i32_0 = arith.constant 0 : i32
    return %arg0, %c0_i32 : i32, i32
  }
}

</mosaic_0001>

<bundles_post_ra>
// kernel: tpu_custom_call.1
= control target key start
LH: loop header
LB: loop body
LE: loop exit
PB: predicated region body
PF: predicated region fallthrough
CT: control target
= control target key end

     0   :  { %vm22_vm0 = vcmask 130048   ;;  %s504_s0 = inlined_call_operand.vmem [shape: f32[16,16], index: 0, kind: input, shape index: {}]   ;;  %s505_s1 = inlined_call_operand.vmem [shape: f32[16,64], index: 1, kind: input, shape index: {}]   ;;  %s506_s2 = inlined_call_operand.vmem [shape: f32[64,32], index: 2, kind: input, shape index: {}]   ;;  %s507_s3 = inlined_call_operand.vmem [shape: f32[16,32], index: 3, kind: input, shape index: {}]   ;;  %s508_s4 = inlined_call_operand.hbm [shape: f32[16,32], index: 4, kind: output, shape index: {}]  }
   0x1   :  { %v20_v0 = vld [vmem:[%s505_s1] sm:$0xff]  ;;  %v21_v1 = vld [vmem:[%s505_s1 + $0x8] sm:$0xff]  ;;  %v116_v7 = vld [vmem:[%s506_s2 + $0x10] sm:$0xff] }
   0x2   :  { %v18_v2 = vld [vmem:[%s504_s0] sm:$0xff]  ;;  %v359_v3 = vpack.c.bf16 %v21_v1, %v20_v0  ;;  %v115_v5 = vld [vmem:[%s506_s2 + $0x8] sm:$0xff]  ;;  %v117_v8 = vld [vmem:[%s506_s2 + $0x18] sm:$0xff] }
   0x3   :  { %330 = vmatprep.mubr.msk.f32.mxu0 %vm22_vm0, %v18_v2  ;;  %v114_v4 = vld [vmem:[%s506_s2] sm:$0xff] }
   0x4   :  { %v367_v6 = vpack.c.bf16 %v115_v5, %v114_v4 }
   0x5   :  { %9 = vsyncpa [#allocation3], 0  ;;  %360 = vmatprep.subr.bf16.mxu0 %v359_v3  ;;  %v371_v9 = vpack.c.bf16 %v117_v8, %v116_v7  ;;  %v19_v10 = vld [vmem:[%s504_s0 + $0x8] sm:$0xff]  ;;  %v118_v11 = vld [vmem:[%s506_s2 + $0x20] sm:$0xff]  ;;  %v104_v20 = vlaneseq  ;;  %vm199_vm2 = vcmask 523264   ;;  %v417_v28 = vmov 0.0  }
   0x6   :  { %362 = vmatpush3.bf16.msra.mxu0 %v359_v3  ;;  %368 = vmatprep.subr.bf16.mxu1 %v367_v6  ;;  %v119_v12 = vld [vmem:[%s506_s2 + $0x28] sm:$0xff]  ;;  %v122_v14 = vld [vmem:[%s507_s3] sm:$0xff]  ;;  %v120_v17 = vld [vmem:[%s506_s2 + $0x30] sm:$0xff]  ;;  %vm281_vm4 = vcmask 261120  }
   0x7   :  { %370 = vmatpush3.bf16.msra.mxu1 %v367_v6  ;;  %v375_v13 = vpack.c.bf16 %v119_v12, %v118_v11  ;;  %v123_v15 = vld [vmem:[%s507_s3 + $0x8] sm:$0xff]  ;;  %v121_v18 = vld [vmem:[%s506_s2 + $0x38] sm:$0xff]  ;;  %v105_v22 = vand.u32 127, %v104_v20  ;;  %s418_s2 = smov [#allocation2]  }
   0x8   :  { %372 = vmatprep.subr.bf16.mxu1 %v371_v9  ;;  %v363_v16 = vpack.c.bf16 %v123_v15, %v122_v14  ;;  %v379_v19 = vpack.c.bf16 %v121_v18, %v120_v17  ;;  %s289_s3 = sshll.u32 %s418_s2, 4  ;;  %s290_s3 = int_to_ptr.vmem [resolvable:$true] %s289_s3 }
   0x9   :  { %331 = vmatmul.mubr.msk.f32.vlgmr.msra.gmra.mrb[0].mxu0 %vm22_vm0, %v19_v10  ;;  %s393_s15 = scalar_lea.vmem %s290_s3, 256  ;;  %p398_p1 = scmp.lt.s32.totalorder %s290_s3, %s290_s3 }
   0xa   :  { %337 = vmatprep.mubr.msk.f32.mxu0 %vm22_vm0, %v18_v2  ;;  %364 = vmatprep.subr.bf16.mxu0 %v363_v16  ;;  %p394_p0 = scmp.ne.s32.totalorder %s290_s3, %s393_s15  ;;  %p399_p2 = scmp.lt.s32.totalorder %s393_s15, %s393_s15 }
   0xb   :  { %374 = vmatpush3.bf16.msra.mxu1 %v371_v9  ;;  %366 = vmatpush3.bf16.msra.mxu0 %v363_v16 }
   0xc   :  { %376 = vmatprep.subr.bf16.mxu1 %v375_v13  ;;  %p400_p3 = por %p399_p2, %p398_p1 }
   0xe   :  { %338 = vmatmul.mubr.msk.f32.vlgmr.msra.gmra.mrb[2].mxu0 %vm22_vm0, %v19_v10  ;;  %p401_p4 = pnand %p400_p3, %p394_p0 }
   0xf   :  { %378 = vmatpush3.bf16.msra.mxu1 %v375_v13 }
  0x10   :  { %380 = vmatprep.subr.bf16.mxu1 %v379_v19 }
  0x13   :  { %382 = vmatpush3.bf16.msra.mxu1 %v379_v19 }
  0xdc   :  { %v332_v21 = vpop.f32.mrb[0].mxu0 }
  0xdd   :  { %v387_v23 = vtrunc.f32 %v332_v21  ;;  %v95_v24 = vpop.f32.mrb[1].mxu0 }
  0xde   :  { %v385_v25 = vtrunc.f32 %v95_v24 }
  0xdf   :  { %v388_v26 = vcvt.f32.s32 %v387_v23 }
  0xe0   :  { %v386_v27 = vcvt.f32.s32 %v385_v25 }
  0xe1   :  { %vm109_vm1 = vcmp.eq.s32.totalorder %v105_v22, %v388_v26  ;;  %v339_v31 = vpop.f32.mrb[2].mxu0 }
  0xe2   :  { %vm108_vm3 = vcmp.eq.s32.totalorder %v105_v22, %v386_v27  ;;  %v303_v30 = vsel %vm109_vm1, 1.0, %v417_v28  ;;  %v190_v32 = vpop.f32.mrb[3].mxu0 }
  0xe3   :  { %v302_v29 = vsel %vm108_vm3, 1.0, %v417_v28 }
  0xe4   :  { %356 = vmatprep.mubr.msk.f32.mxu1 %vm199_vm2, %v302_v29 }
  0xe5   :  { %357 = vmatmul.mubr.msk.f32.vlgmr.msra.gmra.mrb[0].mxu1 %vm199_vm2, %v303_v30 }
 0x1b8   :  { %v358_v33 = vpop.f32.mrb[0].mxu1 }
 0x1b9   :  { %v278_v34 = vadd.f32 %v358_v33, %v339_v31  ;;  %v272_v35 = vpop.f32.mrb[1].mxu1 }
 0x1ba   :  { %v273_v36 = vadd.f32 %v272_v35, %v190_v32 }
 0x1bb   :  { %283 = vst.msk [vmem:[#allocation2 + $0x8] sm:$0xff] %vm281_vm4, %v278_v34 }
 0x1bc   :  { %282 = vst.msk [vmem:[#allocation2] sm:$0xff] %vm281_vm4, %v273_v36 }
 0x1bd   :  { %404 = shalt.err (!%p401_p4)
}
 0x1be   :  { %s405_s18 = scalar_lea.hbm %s508_s4, 256 }
 0x1bf   :  { %p406_p5 = scmp.ne.s32.totalorder %s508_s4, %s405_s18  ;;  %p409_p6 = scmp.lt.u32.totalorder %s405_s18, %s508_s4 }
 0x1c1   :  { %p411_p7 = pnand %p409_p6, %p406_p5 }
 0x1c3   :  { %414 = shalt.err (!%p411_p7)
}
 0x1c4   :  { %s419_s23 = smov 128   ;;  %s420_s24 = smov 8  }
 0x1c5   :  { %295 = dma.vmem_to_hbm [thread:$0]  %s290_s3, 256, %s508_s4, [#allocation3], %s419_s23, %s419_s23, %s420_s24  }
 0x1c6   :  { %415 = dma.done.wait [#allocation3], 256  }
 0x1c7   :  { %416 = vsyncadd [#allocation3], 4294967040 }
 0x1c8   :  { %299 = vsyncpa [#allocation3], 1 }

</bundles_post_ra>
